<compile_context>
chip_gen: v7x
topology: tpu7x:2x2x1
jax: 0.10.0
libtpu: 0.0.40
codegen_flags: <defaults>
</compile_context>

<pallas_src>
import jax
import jax.numpy as jnp
from jax.experimental import pallas as pl
from jax.experimental.pallas import tpu as pltpu

D = 16            # prod(input_dimension) for x of shape (4, 4)
H0, H1 = 32, 32   # hidden_dimensions
PACK = 8          # samples packed per 128-lane row
LD = PACK * D     # 128 : packed x / output width (lane-dense)
LH = PACK * H1    # 256 : packed hidden width


# ------------------------------- kernel ------------------------------------ #
def affine_net_packed_kernel(x_ref, t_ref, w12x_ref, w12t_ref, b12_ref,
                             w3_ref, b3_ref, out_ref):
    # x_ref: (TR, 128) = 8 samples per row; t_ref: (TR, 8) timesteps.
    # Fused Linear(17,32)+Linear(32,32), block-diagonal over the packed samples:
    #   h = x @ W12x_bd + t @ W12t_bd + b12
    h = (jnp.dot(x_ref[...], w12x_ref[...], preferred_element_type=jnp.float32)
         + jnp.dot(t_ref[...], w12t_ref[...], preferred_element_type=jnp.float32)
         + b12_ref[...])
    h = jnp.where(h >= 0, h, 0.01 * h)                     # LeakyReLU(0.01)
    # Linear(32 -> 16), block-diagonal -> fully lane-dense (TR, 128) output.
    out_ref[...] = (jnp.dot(h, w3_ref[...], preferred_element_type=jnp.float32)
                    + b3_ref[...])


# ------------------------------ parameters --------------------------------- #
def init_params(key, input_dim, hidden_dims):
    """Deterministic init mimicking nn.Linear's U(-1/sqrt(fan_in), ...).
    Weights stored (in, out) so forward is row @ W + b (== torch x @ W.T + b)."""
    dims_in = [input_dim + 1, hidden_dims[0], hidden_dims[1]]
    dims_out = [hidden_dims[0], hidden_dims[1], input_dim]
    params = []
    for d_in, d_out in zip(dims_in, dims_out):
        key, kw, kb = jax.random.split(key, 3)
        bound = 1.0 / jnp.sqrt(jnp.float32(d_in))
        w = jax.random.uniform(kw, (d_in, d_out), jnp.float32, -bound, bound)
        b = jax.random.uniform(kb, (1, d_out), jnp.float32, -bound, bound)
        params += [w, b]
    return tuple(params)


def _block_diag(block, n):
    r, c = block.shape
    out = jnp.zeros((n * r, n * c), block.dtype)
    for j in range(n):
        out = out.at[j * r:(j + 1) * r, j * c:(j + 1) * c].set(block)
    return out


def fuse_params(params):
    """Offline (done ONCE): fuse Linear(D+1,H0) @ Linear(H0,H1) — no activation
    between them — then build block-diagonal replicas for PACK samples/row."""
    w1, b1, w2, b2, w3, b3 = params
    w12 = w1.astype(jnp.float32) @ w2.astype(jnp.float32)        # (D+1, H1)
    b12 = b1.astype(jnp.float32) @ w2.astype(jnp.float32) + b2   # (1, H1)
    w12_x, w12_t = w12[:D, :], w12[D:, :]                        # (D,H1), (1,H1)
    w12x_bd = _block_diag(w12_x, PACK)                           # (128, 256)
    w12t_bd = _block_diag(w12_t, PACK)                           # (8, 256)
    w3_bd = _block_diag(w3.astype(jnp.float32), PACK)            # (256, 128)
    b12_bd = jnp.tile(b12, (1, PACK))                            # (1, 256)
    b3_bd = jnp.tile(b3.astype(jnp.float32), (1, PACK))          # (1, 128)
    return w12x_bd, w12t_bd, b12_bd, w3_bd, b3_bd


# ------------------------------- wrappers ----------------------------------- #
def affine_net_forward_batched(xs, timesteps, packed, *, max_tile_rows=256):
    """Many independent (x, t) evaluations in ONE pallas_call.
    max_tile_rows=256 packed rows == 2048 samples per grid step; for very large
    B on v7x this still leaves >= 2 grid steps per TensorCore."""
    B = xs.shape[0]
    sample_shape = xs.shape[1:]
    xs_flat = xs.reshape(B, D).astype(jnp.float32)
    ts = jnp.asarray(timesteps).reshape(B).astype(jnp.float32)

    rows = -(-B // PACK)                        # ceil(B / 8)
    if rows > max_tile_rows:
        tile_rows = max_tile_rows               # multiple of 8 -> legal block
        rows_pad = -(-rows // tile_rows) * tile_rows
    else:
        tile_rows = rows                        # single step; block == full dim
        rows_pad = rows
    b_pad = rows_pad * PACK
    if b_pad != B:                              # zero-padded tail tile
        xs_flat = jnp.pad(xs_flat, ((0, b_pad - B), (0, 0)))
        ts = jnp.pad(ts, (0, b_pad - B))

    x_packed = xs_flat.reshape(rows_pad, LD)    # free row-major reshape
    t_packed = ts.reshape(rows_pad, PACK)
    w12x_bd, w12t_bd, b12_bd, w3_bd, b3_bd = packed

    const = lambda i: (0, 0)                    # weights stay VMEM-resident
    out = pl.pallas_call(
        affine_net_packed_kernel,
        out_shape=jax.ShapeDtypeStruct((rows_pad, LD), jnp.float32),
        grid=(rows_pad // tile_rows,),
        in_specs=[pl.BlockSpec((tile_rows, LD), lambda i: (i, 0)),    # x
                  pl.BlockSpec((tile_rows, PACK), lambda i: (i, 0)),  # t
                  pl.BlockSpec((LD, LH), const),                      # W12x_bd
                  pl.BlockSpec((PACK, LH), const),                    # W12t_bd
                  pl.BlockSpec((1, LH), const),                       # b12
                  pl.BlockSpec((LH, LD), const),                      # W3_bd
                  pl.BlockSpec((1, LD), const)],                      # b3
        out_specs=pl.BlockSpec((tile_rows, LD), lambda i: (i, 0)),
        compiler_params=pltpu.CompilerParams(
            dimension_semantics=("parallel",)),   # split rows across TCs (v7x)
    )(x_packed, t_packed, w12x_bd, w12t_bd, b12_bd, w3_bd, b3_bd)

    out = out.reshape(b_pad, D)[:B]             # free reshape + tail trim
    return out.reshape((B,) + sample_shape)


def affine_net_forward(x, timestep, packed):
    """Exact module forward for a single (x, timestep) pair.  This path is
    dispatch-dominated regardless of kernel shape, so it reuses the packed
    batched kernel (one tiny tile) instead of a dedicated 1-row kernel."""
    out = affine_net_forward_batched(x[None], jnp.reshape(timestep, (1,)),
                                     packed)
    return out[0]


# ------------------------- pure-JAX reference ------------------------------- #
def affine_net_ref(x, timestep, params):
    w1, b1, w2, b2, w3, b3 = params
    x_shape = x.shape
    inp = jnp.concatenate(
        [x.reshape(1, -1).astype(jnp.float32),
         timestep.reshape(1, 1).astype(jnp.float32)], axis=-1)
    h = inp @ w1 + b1
    h = h @ w2 + b2
    h = jnp.where(h >= 0, h, 0.01 * h)
    return (h @ w3 + b3).reshape(x_shape)


if __name__ == "__main__":
    key = jax.random.PRNGKey(0)
    k_x, k_t, k_p, k_bx, k_bt = jax.random.split(key, 5)

    # config: input_dimension -> prod((4, 4)) = 16, hidden_dimensions = (32, 32)
    x = jax.random.normal(k_x, (4, 4), jnp.float32)
    timestep = jax.random.uniform(k_t, (), jnp.float32)
    params = init_params(k_p, input_dim=D, hidden_dims=(H0, H1))
    packed = fuse_params(params)

    # single-sample forward (matches the PyTorch module exactly)
    out = affine_net_forward(x, timestep, packed)
    jax.block_until_ready(out)
    ref = affine_net_ref(x, timestep, params)
    assert out.shape == x.shape
    assert jnp.allclose(out, ref, atol=1e-5, rtol=1e-5)

    # batched forward: B deliberately NOT a multiple of 8 or the tile size, to
    # exercise the cdiv grid + zero-padded tail.  max_tile_rows=64 keeps the
    # demo small while still producing a grid of length > 1.
    B = 1000
    xs = jax.random.normal(k_bx, (B, 4, 4), jnp.float32)
    ts = jax.random.uniform(k_bt, (B,), jnp.float32)
    outs = affine_net_forward_batched(xs, ts, packed, max_tile_rows=64)
    jax.block_until_ready(outs)
    refs = jax.vmap(lambda xi, ti: affine_net_ref(xi, ti, params))(xs, ts)
    assert outs.shape == xs.shape
    assert jnp.allclose(outs, refs, atol=1e-5, rtol=1e-5)

    print("KERNEL_OK")
</pallas_src>

<mosaic_0001>
module attributes {stable_mosaic.version = 11 : i64} {
  func.func @affine_net_packed_kernel(%arg0: i32, %arg1: memref<1x128xf32, #tpu.memory_space<vmem>>, %arg2: memref<1x8xf32, #tpu.memory_space<vmem>>, %arg3: memref<128x256xf32, #tpu.memory_space<vmem>>, %arg4: memref<8x256xf32, #tpu.memory_space<vmem>>, %arg5: memref<1x256xf32, #tpu.memory_space<vmem>>, %arg6: memref<256x128xf32, #tpu.memory_space<vmem>>, %arg7: memref<1x128xf32, #tpu.memory_space<vmem>>, %arg8: memref<1x128xf32, #tpu.memory_space<vmem>>) attributes {dimension_semantics = [#tpu.dimension_semantics<parallel>], iteration_bounds = array<i64: 1>, scalar_prefetch = 0 : i64, scratch_operands = 0 : i64, tpu.core_type = #tpu.core_type<tc>, window_params = [{transform_indices = @transform_0, window_bounds = array<i64: 1, 128>}, {transform_indices = @transform_1, window_bounds = array<i64: 1, 8>}, {pipeline_mode = #tpu.pipeline_mode<synchronous>, transform_indices = @transform_2, window_bounds = array<i64: 128, 256>}, {pipeline_mode = #tpu.pipeline_mode<synchronous>, transform_indices = @transform_3, window_bounds = array<i64: 8, 256>}, {pipeline_mode = #tpu.pipeline_mode<synchronous>, transform_indices = @transform_4, window_bounds = array<i64: 1, 256>}, {pipeline_mode = #tpu.pipeline_mode<synchronous>, transform_indices = @transform_5, window_bounds = array<i64: 256, 128>}, {pipeline_mode = #tpu.pipeline_mode<synchronous>, transform_indices = @transform_6, window_bounds = array<i64: 1, 128>}, {transform_indices = @transform_7, window_bounds = array<i64: 1, 128>}]} {
    %c0 = arith.constant 0 : index
    %c0_0 = arith.constant 0 : index
    %0 = vector.load %arg1[%c0, %c0_0] : memref<1x128xf32, #tpu.memory_space<vmem>>, vector<1x128xf32>
    %c0_1 = arith.constant 0 : index
    %c0_2 = arith.constant 0 : index
    %1 = vector.load %arg3[%c0_1, %c0_2] : memref<128x256xf32, #tpu.memory_space<vmem>>, vector<128x256xf32>
    %cst = arith.constant dense<0.000000e+00> : vector<1x256xf32>
    %2 = tpu.matmul %0, %1, %cst {dimension_numbers = #tpu.dot_dimension_numbers<[1], [0], [0], [1], [0, 0, 1, 1], [], []>} : vector<1x128xf32>, vector<128x256xf32>, vector<1x256xf32> -> vector<1x256xf32>
    %c0_3 = arith.constant 0 : index
    %c0_4 = arith.constant 0 : index
    %3 = vector.load %arg2[%c0_3, %c0_4] : memref<1x8xf32, #tpu.memory_space<vmem>>, vector<1x8xf32>
    %c0_5 = arith.constant 0 : index
    %c0_6 = arith.constant 0 : index
    %4 = vector.load %arg4[%c0_5, %c0_6] : memref<8x256xf32, #tpu.memory_space<vmem>>, vector<8x256xf32>
    %cst_7 = arith.constant dense<0.000000e+00> : vector<1x256xf32>
    %5 = tpu.matmul %3, %4, %cst_7 {dimension_numbers = #tpu.dot_dimension_numbers<[1], [0], [0], [1], [0, 0, 1, 1], [], []>} : vector<1x8xf32>, vector<8x256xf32>, vector<1x256xf32> -> vector<1x256xf32>
    %6 = arith.addf %2, %5 : vector<1x256xf32>
    %c0_8 = arith.constant 0 : index
    %c0_9 = arith.constant 0 : index
    %7 = vector.load %arg5[%c0_8, %c0_9] : memref<1x256xf32, #tpu.memory_space<vmem>>, vector<1x256xf32>
    %8 = arith.addf %6, %7 : vector<1x256xf32>
    %cst_10 = arith.constant 0.000000e+00 : f32
    %9 = vector.broadcast %cst_10 : f32 to vector<1x256xf32>
    %10 = arith.cmpf oge, %8, %9 : vector<1x256xf32>
    %cst_11 = arith.constant 0.00999999977 : f32
    %11 = vector.broadcast %cst_11 : f32 to vector<1x256xf32>
    %12 = arith.mulf %11, %8 : vector<1x256xf32>
    %13 = arith.select %10, %8, %12 : vector<1x256xi1>, vector<1x256xf32>
    %c0_12 = arith.constant 0 : index
    %c0_13 = arith.constant 0 : index
    %14 = vector.load %arg6[%c0_12, %c0_13] : memref<256x128xf32, #tpu.memory_space<vmem>>, vector<256x128xf32>
    %cst_14 = arith.constant dense<0.000000e+00> : vector<1x128xf32>
    %15 = tpu.matmul %13, %14, %cst_14 {dimension_numbers = #tpu.dot_dimension_numbers<[1], [0], [0], [1], [0, 0, 1, 1], [], []>} : vector<1x256xf32>, vector<256x128xf32>, vector<1x128xf32> -> vector<1x128xf32>
    %c0_15 = arith.constant 0 : index
    %c0_16 = arith.constant 0 : index
    %16 = vector.load %arg7[%c0_15, %c0_16] : memref<1x128xf32, #tpu.memory_space<vmem>>, vector<1x128xf32>
    %17 = arith.addf %15, %16 : vector<1x128xf32>
    %c0_17 = arith.constant 0 : index
    %c0_18 = arith.constant 0 : index
    %18 = vector.load %arg8[%c0_17, %c0_18] : memref<1x128xf32, #tpu.memory_space<vmem>>, vector<1x128xf32>
    tpu.vector_store %arg8[%c0_17, %c0_18], %17 {strides = array<i32>} : memref<1x128xf32, #tpu.memory_space<vmem>>, vector<1x128xf32>,
    return
  }
  func.func @transform_0(%arg0: i32) -> (i32, i32) {
    %c0_i32 = arith.constant 0 : i32
    %c0_i32_0 = arith.constant 0 : i32
    return %arg0, %c0_i32 : i32, i32
  }
  func.func @transform_1(%arg0: i32) -> (i32, i32) {
    %c0_i32 = arith.constant 0 : i32
    %c0_i32_0 = arith.constant 0 : i32
    return %arg0, %c0_i32 : i32, i32
  }
  func.func @transform_2(%arg0: i32) -> (i32, i32) {
    %c0_i32 = arith.constant 0 : i32
    %c0_i32_0 = arith.constant 0 : i32
    %c0_i32_1 = arith.constant 0 : i32
    return %c0_i32, %c0_i32_0 : i32, i32
  }
  func.func @transform_3(%arg0: i32) -> (i32, i32) {
    %c0_i32 = arith.constant 0 : i32
    %c0_i32_0 = arith.constant 0 : i32
    %c0_i32_1 = arith.constant 0 : i32
    return %c0_i32, %c0_i32_0 : i32, i32
  }
  func.func @transform_4(%arg0: i32) -> (i32, i32) {
    %c0_i32 = arith.constant 0 : i32
    %c0_i32_0 = arith.constant 0 : i32
    %c0_i32_1 = arith.constant 0 : i32
    return %c0_i32, %c0_i32_0 : i32, i32
  }
  func.func @transform_5(%arg0: i32) -> (i32, i32) {
    %c0_i32 = arith.constant 0 : i32
    %c0_i32_0 = arith.constant 0 : i32
    %c0_i32_1 = arith.constant 0 : i32
    return %c0_i32, %c0_i32_0 : i32, i32
  }
  func.func @transform_6(%arg0: i32) -> (i32, i32) {
    %c0_i32 = arith.constant 0 : i32
    %c0_i32_0 = arith.constant 0 : i32
    %c0_i32_1 = arith.constant 0 : i32
    return %c0_i32, %c0_i32_0 : i32, i32
  }
  func.func @transform_7(%arg0: i32) -> (i32, i32) {
    %c0_i32 = arith.constant 0 : i32
    %c0_i32_0 = arith.constant 0 : i32
    return %arg0, %c0_i32 : i32, i32
  }
}

</mosaic_0001>

<bundles_post_ra>
// kernel: tpu_custom_call.1
= control target key start
LH: loop header
LB: loop body
LE: loop exit
PB: predicated region body
PF: predicated region fallthrough
CT: control target
= control target key end

     0   :  { %12 = vsyncpa [#allocation3], 0  ;;  %s750_s0 = inlined_call_operand.hbm [shape: f32[1,128], index: 0, kind: input, shape index: {}]   ;;  %s751_s1 = inlined_call_operand.vmem [shape: f32[1,8], index: 1, kind: input, shape index: {}]   ;;  %s752_s2 = inlined_call_operand.hbm [shape: f32[128,256], index: 2, kind: input, shape index: {}]   ;;  %s753_s3 = inlined_call_operand.hbm [shape: f32[8,256], index: 3, kind: input, shape index: {}]   ;;  %s754_s4 = inlined_call_operand.vmem [shape: f32[1,256], index: 4, kind: input, shape index: {}]   ;;  %s755_s5 = inlined_call_operand.hbm [shape: f32[256,128], index: 5, kind: input, shape index: {}]   ;;  %s756_s6 = inlined_call_operand.vmem [shape: f32[1,128], index: 6, kind: input, shape index: {}]   ;;  %s757_s7 = inlined_call_operand.hbm [shape: f32[1,128], index: 7, kind: output, shape index: {}]  }
   0x1   :  { %13 = vsyncpa [#allocation6], 0 }
   0x2   :  { %14 = vsyncpa [#allocation9], 0 }
   0x3   :  { %15 = vsyncpa [#allocation4], 0  ;;  %s631_s24 = smov [#allocation5]   ;;  %s513_s28 = scalar_lea.hbm %s752_s2, 4096 }
   0x4   :  { %s33_s25 = sshll.u32 %s631_s24, 4  ;;  %p514_p0 = scmp.ne.s32.totalorder %s752_s2, %s513_s28  ;;  %s34_s25 = int_to_ptr.vmem [resolvable:$true] %s33_s25 }
   0x5   :  { %p517_p1 = scmp.lt.u32.totalorder %s513_s28, %s752_s2 }
   0x7   :  { %p519_p2 = pnand %p517_p1, %p514_p0 }
   0x9   :  { %522 = shalt.err (!%p519_p2)
}
   0xa   :  { %s523_s10 = scalar_lea.vmem %s34_s25, 4096  ;;  %p528_p4 = scmp.lt.s32.totalorder %s34_s25, %s34_s25 }
   0xb   :  { %p524_p3 = scmp.ne.s32.totalorder %s34_s25, %s523_s10  ;;  %p529_p5 = scmp.lt.s32.totalorder %s523_s10, %s523_s10 }
   0xd   :  { %p530_p6 = por %p529_p5, %p528_p4 }
   0xf   :  { %p531_p7 = pnand %p530_p6, %p524_p3 }
  0x11   :  { %534 = shalt.err (!%p531_p7)
}
  0x12   :  { %s632_s11 = smov 256   ;;  %s633_s12 = smov 16  }
  0x13   :  { %39 = dma.hbm_to_vmem [thread:$0]  %s752_s2, 4096, %s34_s25, [#allocation6], %s632_s11, %s632_s11, %s633_s12  }
  0x14   :  { %s634_s15 = smov [#allocation2]   ;;  %s635_s17 = smov [#allocation7]  }
  0x15   :  { %s22_s16 = sshll.u32 %s634_s15, 4  ;;  %s46_s18 = sshll.u32 %s635_s17, 4  ;;  %s23_s16 = int_to_ptr.vmem [resolvable:$true] %s22_s16  ;;  %s47_s18 = int_to_ptr.vmem [resolvable:$true] %s46_s18 }
  0x16   :  { %s535_s21 = scalar_lea.hbm %s750_s0, 16 }
  0x17   :  { %p536_p8 = scmp.ne.s32.totalorder %s750_s0, %s535_s21  ;;  %p539_p9 = scmp.lt.u32.totalorder %s535_s21, %s750_s0 }
  0x19   :  { %p541_p10 = pnand %p539_p9, %p536_p8 }
  0x1b   :  { %544 = shalt.err (!%p541_p10)
}
  0x1c   :  { %s545_s2 = scalar_lea.vmem %s23_s16, 16  ;;  %s549_s25 = scalar_lea.vmem %s23_s16, 32 }
  0x1d   :  { %p546_p11 = scmp.ne.s32.totalorder %s23_s16, %s545_s2  ;;  %p550_p12 = scmp.lt.s32.totalorder %s23_s16, %s23_s16 }
  0x1e   :  { %p551_p13 = scmp.lt.s32.totalorder %s549_s25, %s545_s2 }
  0x20   :  { %p552_p0 = por %p551_p13, %p550_p12 }
  0x22   :  { %p553_p1 = pnand %p552_p0, %p546_p11 }
  0x24   :  { %556 = shalt.err (!%p553_p1)
}
  0x25   :  { %25 = dma.hbm_to_vmem [thread:$0]  %s750_s0, 16, %s23_s16, [#allocation3]  }
  0x26   :  { %s557_s8 = scalar_lea.hbm %s753_s3, 256 }
  0x27   :  { %p558_p2 = scmp.ne.s32.totalorder %s753_s3, %s557_s8  ;;  %p561_p3 = scmp.lt.u32.totalorder %s557_s8, %s753_s3 }
  0x29   :  { %p563_p4 = pnand %p561_p3, %p558_p2 }
  0x2b   :  { %566 = shalt.err (!%p563_p4)
}
  0x2c   :  { %s567_s13 = scalar_lea.vmem %s47_s18, 256  ;;  %p572_p6 = scmp.lt.s32.totalorder %s47_s18, %s47_s18 }
  0x2d   :  { %p568_p5 = scmp.ne.s32.totalorder %s47_s18, %s567_s13  ;;  %p573_p7 = scmp.lt.s32.totalorder %s567_s13, %s567_s13 }
  0x2f   :  { %p574_p8 = por %p573_p7, %p572_p6 }
  0x31   :  { %p575_p9 = pnand %p574_p8, %p568_p5 }
  0x33   :  { %578 = shalt.err (!%p575_p9)
}
  0x34   :  { %49 = dma.hbm_to_vmem [thread:$0]  %s753_s3, 256, %s47_s18, [#allocation6]  }
  0x35   :  { %s636_s15 = smov [#allocation8]   ;;  %s579_s20 = scalar_lea.hbm %s755_s5, 4096 }
  0x36   :  { %s57_s16 = sshll.u32 %s636_s15, 4  ;;  %p580_p10 = scmp.ne.s32.totalorder %s755_s5, %s579_s20  ;;  %s58_s16 = int_to_ptr.vmem [resolvable:$true] %s57_s16 }
  0x37   :  { %p583_p11 = scmp.lt.u32.totalorder %s579_s20, %s755_s5 }
  0x39   :  { %p585_p12 = pnand %p583_p11, %p580_p10 }
  0x3b   :  { %588 = shalt.err (!%p585_p12)
}
  0x3c   :  { %s589_s26 = scalar_lea.vmem %s58_s16, 4096  ;;  %p594_p0 = scmp.lt.s32.totalorder %s58_s16, %s58_s16 }
  0x3d   :  { %p590_p13 = scmp.ne.s32.totalorder %s58_s16, %s589_s26  ;;  %p595_p1 = scmp.lt.s32.totalorder %s589_s26, %s589_s26 }
  0x3f   :  { %p596_p2 = por %p595_p1, %p594_p0 }
  0x41   :  { %p597_p3 = pnand %p596_p2, %p590_p13 }
  0x43   :  { %600 = shalt.err (!%p597_p3)
}
  0x44   :  { %s637_s3 = smov 128   ;;  %s638_s18 = smov 8  }
  0x45   :  { %63 = dma.hbm_to_vmem [thread:$0]  %s755_s5, 4096, %s58_s16, [#allocation9], %s637_s3, %s637_s3, %s638_s18  }
  0x46   :  { %623 = dma.done.wait [#allocation3], 16  }
  0x47   :  { %624 = vsyncadd [#allocation3], 4294967280 }
  0x48   :  { %625 = dma.done.wait [#allocation6], 4352  }
  0x49   :  { %626 = vsyncadd [#allocation6], 4294962944 }
  0x4a   :  { %627 = dma.done.wait [#allocation9], 4096  }
  0x4b   :  { %628 = vsyncadd [#allocation9], 4294963200  ;;  %v639_v0 = vmov 0.0   ;;  %v113_v1 = vld [vmem:[#allocation7 + $0x8] sm:$0xff]  ;;  %v112_v2 = vld [vmem:[#allocation7] sm:$0xff]  ;;  %vm114_vm0 = vcmask 64512  }
  0x4c   :  { %182 = vmatprep.mubr.f32.mxu0 %v639_v0  ;;  %v80_v3 = vld [vmem:[#allocation5 + $0x8] sm:$0xff]  ;;  %118 = vmatprep.subr.mxu0 %v113_v1  ;;  %v82_v4 = vld [vmem:[#allocation5 + $0x18] sm:$0xff]  ;;  %v111_v5 = vld [vmem:[%s751_s1] sm:$0x1] }
  0x4d   :  { %v79_v6 = vld [vmem:[#allocation5] sm:$0xff]  ;;  %119 = vmatpush1.msra.mxu0 %v112_v2  ;;  %v437_v7 = vpack.c.bf16 %v82_v4, %v80_v3  ;;  %v81_v8 = vld [vmem:[#allocation5 + $0x10] sm:$0xff]  ;;  %v84_v9 = vld [vmem:[#allocation5 + $0x28] sm:$0xff] }
  0x4e   :  { %v86_v10 = vld [vmem:[#allocation5 + $0x38] sm:$0xff]  ;;  %401 = vmatmul.mubr.msk.f32.vlgmr.msra.gmra.mrb[0].mxu0 %vm114_vm0, %v111_v5  ;;  %v439_v11 = vpack.c.bf16 %v81_v8, %v79_v6  ;;  %v83_v13 = vld [vmem:[#allocation5 + $0x20] sm:$0xff]  ;;  %v85_v14 = vld [vmem:[#allocation5 + $0x30] sm:$0xff] }
  0x4f   :  { %v441_v12 = vpack.c.bf16 %v86_v10, %v84_v9  ;;  %v88_v15 = vld [vmem:[#allocation5 + $0x48] sm:$0xff]  ;;  %438 = vmatprep.subr.bf16.mxu0 %v437_v7  ;;  %v90_v16 = vld [vmem:[#allocation5 + $0x58] sm:$0xff]  ;;  %253 = vmatprep.mubr.f32.mxu0 %v639_v0  ;;  %v443_v17 = vpack.c.bf16 %v85_v14, %v83_v13  ;;  %v87_v19 = vld [vmem:[#allocation5 + $0x40] sm:$0xff] }
  0x50   :  { %440 = vmatpush1.bf16.msra.mxu0 %v439_v11  ;;  %v445_v18 = vpack.c.bf16 %v90_v16, %v88_v15  ;;  %v89_v20 = vld [vmem:[#allocation5 + $0x50] sm:$0xff]  ;;  %v92_v21 = vld [vmem:[#allocation5 + $0x68] sm:$0xff]  ;;  %v94_v22 = vld [vmem:[#allocation5 + $0x78] sm:$0xff] }
  0x51   :  { %442 = vmatprep.subr.bf16.mxu0 %v441_v12  ;;  %v447_v23 = vpack.c.bf16 %v89_v20, %v87_v19  ;;  %v449_v24 = vpack.c.bf16 %v94_v22, %v92_v21  ;;  %v91_v25 = vld [vmem:[#allocation5 + $0x60] sm:$0xff]  ;;  %v93_v26 = vld [vmem:[#allocation5 + $0x70] sm:$0xff]  ;;  %v96_v27 = vld [vmem:[#allocation5 + $0x88] sm:$0xff] }
  0x52   :  { %v98_v28 = vld [vmem:[#allocation5 + $0x98] sm:$0xff]  ;;  %v95_v29 = vld [vmem:[#allocation5 + $0x80] sm:$0xff]  ;;  %v97_v30 = vld [vmem:[#allocation5 + $0x90] sm:$0xff]  ;;  %v451_v34 = vpack.c.bf16 %v93_v26, %v91_v25 }
  0x53   :  { %v296_v31 = vld [vmem:[#allocation8 + $0x80] sm:$0xff]  ;;  %v297_v32 = vld [vmem:[#allocation8 + $0x88] sm:$0xff]  ;;  %v298_v37 = vld [vmem:[#allocation8 + $0x90] sm:$0xff]  ;;  %v453_v39 = vpack.c.bf16 %v98_v28, %v96_v27  ;;  %v455_v49 = vpack.c.bf16 %v97_v30, %v95_v29 }
  0x54   :  { %444 = vmatpush1.bf16.msra.mxu0 %v443_v17  ;;  %v280_v33 = vld [vmem:[#allocation8] sm:$0xff]  ;;  %v469_v35 = vpack.c.bf16 %v297_v32, %v296_v31  ;;  %v281_v36 = vld [vmem:[#allocation8 + $0x8] sm:$0xff]  ;;  %v299_v38 = vld [vmem:[#allocation8 + $0x98] sm:$0xff] }
  0x55   :  { %446 = vmatprep.subr.bf16.mxu0 %v445_v18  ;;  %v471_v40 = vpack.c.bf16 %v281_v36, %v280_v33  ;;  %v473_v41 = vpack.c.bf16 %v299_v38, %v298_v37  ;;  %v282_v42 = vld [vmem:[#allocation8 + $0x10] sm:$0xff]  ;;  %v283_v43 = vld [vmem:[#allocation8 + $0x18] sm:$0xff]  ;;  %v300_v44 = vld [vmem:[#allocation8 + $0xa0] sm:$0xff]  ;;  %v262_v37 = vlaneseq }
  0x56   :  { %v100_v45 = vld [vmem:[#allocation5 + $0xa8] sm:$0xff]  ;;  %v102_v46 = vld [vmem:[#allocation5 + $0xb8] sm:$0xff]  ;;  %470 = vmatprep.subr.bf16.mxu1 %v469_v35  ;;  %v475_v48 = vpack.c.bf16 %v283_v43, %v282_v42  ;;  %v99_v50 = vld [vmem:[#allocation5 + $0xa0] sm:$0xff] }
  0x57   :  { %v301_v47 = vld [vmem:[#allocation8 + $0xa8] sm:$0xff]  ;;  %472 = vmatpush3.bf16.msra.mxu1 %v471_v40  ;;  %v284_v52 = vld [vmem:[#allocation8 + $0x20] sm:$0xff]  ;;  %v457_v54 = vpack.c.bf16 %v102_v46, %v100_v45  ;;  %v302_v56 = vld [vmem:[#allocation8 + $0xb0] sm:$0xff]  ;;  %v263_v38 = vshrl.u32 %v262_v37, 7 }
  0x58   :  { %448 = vmatpush1.bf16.msra.mxu0 %v447_v23  ;;  %474 = vmatprep.subr.bf16.mxu1 %v473_v41  ;;  %v477_v51 = vpack.c.bf16 %v301_v47, %v300_v44  ;;  %v285_v53 = vld [vmem:[#allocation8 + $0x28] sm:$0xff]  ;;  %v101_v55 = vld [vmem:[#allocation5 + $0xb0] sm:$0xff]  ;;  %v303_v57 = vld [vmem:[#allocation8 + $0xb8] sm:$0xff] }
  0x59   :  { %450 = vmatprep.subr.bf16.mxu0 %v449_v24  ;;  %v104_v58 = vld [vmem:[#allocation5 + $0xc8] sm:$0xff]  ;;  %v106_v59 = vld [vmem:[#allocation5 + $0xd8] sm:$0xff]  ;;  %v479_v60 = vpack.c.bf16 %v285_v53, %v284_v52  ;;  %v459_v61 = vpack.c.bf16 %v101_v55, %v99_v50  ;;  %v103_v62 = vld [vmem:[#allocation5 + $0xc0] sm:$0xff]  ;;  %v481_v63 = vpack.c.bf16 %v303_v57, %v302_v56  ;;  %v268_v41 = vsub.s32 1, %v263_v38 }
  0x5a   :  { %v286_v0 = vld [vmem:[#allocation8 + $0x30] sm:$0xff]  ;;  %v287_v1 = vld [vmem:[#allocation8 + $0x38] sm:$0xff]  ;;  %v461_v2 = vpack.c.bf16 %v106_v59, %v104_v58  ;;  %v105_v3 = vld [vmem:[#allocation5 + $0xd0] sm:$0xff] }
  0x5b   :  { %476 = vmatpush3.bf16.msra.mxu1 %v475_v48  ;;  %v304_v4 = vld [vmem:[#allocation8 + $0xc0] sm:$0xff]  ;;  %v305_v5 = vld [vmem:[#allocation8 + $0xc8] sm:$0xff]  ;;  %v108_v6 = vld [vmem:[#allocation5 + $0xe8] sm:$0xff]  ;;  %v483_v8 = vpack.c.bf16 %v287_v1, %v286_v0  ;;  %v463_v9 = vpack.c.bf16 %v105_v3, %v103_v62 }
  0x5c   :  { %452 = vmatpush1.bf16.msra.mxu0 %v451_v34  ;;  %478 = vmatprep.subr.bf16.mxu1 %v477_v51  ;;  %v110_v7 = vld [vmem:[#allocation5 + $0xf8] sm:$0xff]  ;;  %v107_v10 = vld [vmem:[#allocation5 + $0xe0] sm:$0xff]  ;;  %v485_v11 = vpack.c.bf16 %v305_v5, %v304_v4  ;;  %v288_v12 = vld [vmem:[#allocation8 + $0x40] sm:$0xff] }
  0x5d   :  { %454 = vmatprep.subr.bf16.mxu0 %v453_v39  ;;  %v289_v13 = vld [vmem:[#allocation8 + $0x48] sm:$0xff]  ;;  %v465_v14 = vpack.c.bf16 %v110_v7, %v108_v6  ;;  %v109_v15 = vld [vmem:[#allocation5 + $0xf0] sm:$0xff]  ;;  %v306_v16 = vld [vmem:[#allocation8 + $0xd0] sm:$0xff]  ;;  %v264_v39 = vsub.s32 0, %v263_v38 }
  0x5e   :  { %v307_v17 = vld [vmem:[#allocation8 + $0xd8] sm:$0xff]  ;;  %v487_v18 = vpack.c.bf16 %v289_v13, %v288_v12  ;;  %v467_v19 = vpack.c.bf16 %v109_v15, %v107_v10  ;;  %v290_v21 = vld [vmem:[#allocation8 + $0x50] sm:$0xff]  ;;  %v78_v24 = vld [vmem:[#allocation2] sm:$0x1] }
  0x5f   :  { %480 = vmatpush3.bf16.msra.mxu1 %v479_v60  ;;  %v489_v20 = vpack.c.bf16 %v307_v17, %v306_v16  ;;  %v291_v22 = vld [vmem:[#allocation8 + $0x58] sm:$0xff]  ;;  %v308_v25 = vld [vmem:[#allocation8 + $0xe0] sm:$0xff]  ;;  %v309_v26 = vld [vmem:[#allocation8 + $0xe8] sm:$0xff] }
  0x60   :  { %456 = vmatpush1.bf16.msra.mxu0 %v455_v49  ;;  %482 = vmatprep.subr.bf16.mxu1 %v481_v63  ;;  %v491_v23 = vpack.c.bf16 %v291_v22, %v290_v21  ;;  %v493_v27 = vpack.c.bf16 %v309_v26, %v308_v25  ;;  %v292_v28 = vld [vmem:[#allocation8 + $0x60] sm:$0xff]  ;;  %v293_v29 = vld [vmem:[#allocation8 + $0x68] sm:$0xff]  ;;  %v310_v31 = vld [vmem:[#allocation8 + $0xf0] sm:$0xff] }
  0x61   :  { %458 = vmatprep.subr.bf16.mxu0 %v457_v54  ;;  %v495_v30 = vpack.c.bf16 %v293_v29, %v292_v28  ;;  %v311_v32 = vld [vmem:[#allocation8 + $0xf8] sm:$0xff]  ;;  %v294_v34 = vld [vmem:[#allocation8 + $0x70] sm:$0xff]  ;;  %v260_v40 = vld [vmem:[%s754_s4] sm:$0x3]  ;;  %s640_s4 = smov [#allocation10]  }
  0x62   :  { %v497_v33 = vpack.c.bf16 %v311_v32, %v310_v31  ;;  %v295_v35 = vld [vmem:[#allocation8 + $0x78] sm:$0xff]  ;;  %v265_v42 = vrot.slane %v260_v40, %v264_v39  ;;  %v269_v43 = vrot.slane %v260_v40, %v268_v41  ;;  %v312_v53 = vld [vmem:[%s756_s6] sm:$0x1]  ;;  %s390_s8 = sshll.u32 %s640_s4, 4  ;;  %s391_s8 = int_to_ptr.vmem [resolvable:$true] %s390_s8 }
  0x63   :  { %484 = vmatpush3.bf16.msra.mxu1 %v483_v8  ;;  %v499_v36 = vpack.c.bf16 %v295_v35, %v294_v34  ;;  %s601_s9 = scalar_lea.vmem %s391_s8, 16  ;;  %s605_s10 = scalar_lea.vmem %s391_s8, 32 }
  0x64   :  { %460 = vmatpush1.bf16.msra.mxu0 %v459_v61  ;;  %486 = vmatprep.subr.bf16.mxu1 %v485_v11  ;;  %p602_p4 = scmp.ne.s32.totalorder %s391_s8, %s601_s9  ;;  %p606_p5 = scmp.lt.s32.totalorder %s391_s8, %s391_s8 }
  0x65   :  { %462 = vmatprep.subr.bf16.mxu0 %v461_v2  ;;  %p607_p6 = scmp.lt.s32.totalorder %s605_s10, %s601_s9 }
  0x67   :  { %488 = vmatpush3.bf16.msra.mxu1 %v487_v18  ;;  %p608_p7 = por %p607_p6, %p606_p5 }
  0x68   :  { %464 = vmatpush1.bf16.msra.mxu0 %v463_v9  ;;  %490 = vmatprep.subr.bf16.mxu1 %v489_v20 }
  0x69   :  { %466 = vmatprep.subr.bf16.mxu0 %v465_v14  ;;  %p609_p8 = pnand %p608_p7, %p602_p4 }
  0x6b   :  { %492 = vmatpush3.bf16.msra.mxu1 %v491_v23 }
  0x6c   :  { %468 = vmatpush1.bf16.msra.mxu0 %v467_v19  ;;  %494 = vmatprep.subr.bf16.mxu1 %v493_v27 }
  0x6f   :  { %254 = vmatmul.mubr.f32.vlgmr.msra.gmra.mrb[0].mxu0 %v78_v24  ;;  %496 = vmatpush3.bf16.msra.mxu1 %v495_v30 }
  0x70   :  { %498 = vmatprep.subr.bf16.mxu1 %v497_v33 }
  0x73   :  { %500 = vmatpush3.bf16.msra.mxu1 %v499_v36 }
 0x142   :  { %v255_v44 = vpop.f32.mrb[0].mxu0 }
 0x143   :  { %v272_v45 = vadd.f32 %v265_v42, %v255_v44  ;;  %v257_v46 = vpop.f32.mrb[1].mxu0 }
 0x144   :  { %v273_v47 = vadd.f32 %v269_v43, %v257_v46 }
 0x145   :  { %v276_v48 = vmul.f32 0.01, %v272_v45  ;;  %vm274_vm2 = vcmp.ge.f32.partialorder %v272_v45, 0.0 }
 0x146   :  { %vm275_vm1 = vcmp.ge.f32.partialorder %v273_v47, 0.0  ;;  %v277_v49 = vmul.f32 0.01, %v273_v47 }
 0x147   :  { %v278_v51 = vsel %vm274_vm2, %v272_v45, %v276_v48 }
 0x148   :  { %v279_v50 = vsel %vm275_vm1, %v273_v47, %v277_v49 }
 0x149   :  { %377 = vmatprep.mubr.f32.mxu1 %v279_v50 }
 0x14a   :  { %378 = vmatmul.mubr.f32.vlgmr.msra.gmra.mrb[0].mxu1 %v278_v51 }
 0x21d   :  { %v434_v52 = vpop.f32.mrb[0].mxu1 }
 0x21e   :  { %v435_v54 = vpop.f32.mrb[1].mxu1 }
 0x21f   :  { %v436_v55 = vadd.f32 %v435_v54, %v434_v52 }
 0x221   :  { %v380_v56 = vadd.f32 %v436_v55, %v312_v53 }
 0x223   :  { %383 = vst [vmem:[#allocation10] sm:$0x1] %v380_v56 }
 0x224   :  { %612 = shalt.err (!%p609_p8)
}
 0x225   :  { %s613_s13 = scalar_lea.hbm %s757_s7, 16 }
 0x226   :  { %p614_p9 = scmp.ne.s32.totalorder %s757_s7, %s613_s13  ;;  %p617_p10 = scmp.lt.u32.totalorder %s613_s13, %s757_s7 }
 0x228   :  { %p619_p11 = pnand %p617_p10, %p614_p9 }
 0x22a   :  { %622 = shalt.err (!%p619_p11)
}
 0x22b   :  { %393 = dma.vmem_to_hbm [thread:$0]  %s391_s8, 16, %s757_s7, [#allocation4]  }
 0x22c   :  { %629 = dma.done.wait [#allocation4], 16  }
 0x22d   :  { %630 = vsyncadd [#allocation4], 4294967280 }
 0x22e   :  { %397 = vsyncpa [#allocation3], 1 }
 0x22f   :  { %398 = vsyncpa [#allocation6], 1 }
 0x230   :  { %399 = vsyncpa [#allocation9], 1 }
 0x231   :  { %400 = vsyncpa [#allocation4], 1 }

</bundles_post_ra>
